<compile_context>
chip_gen: v7x
topology: tpu7x:2x2x1
jax: 0.10.0
libtpu: 0.0.40
codegen_flags: <defaults>
</compile_context>

<pallas_src>
import jax
import jax.numpy as jnp
from jax import lax
from jax.experimental import pallas as pl
from jax.experimental.pallas import tpu as pltpu


def _location_kernel(x_ref, w_ref, o_ref):
    # x_ref: (tm, K*C)     im2col'd rows (rows = flattened B*T)
    # w_ref: (K*C, A_out)  fused conv+dense weight
    # o_ref: (tm, A_out)   written in the caller's dtype
    o_ref[...] = jnp.dot(
        x_ref[...], w_ref[...], preferred_element_type=jnp.float32
    ).astype(o_ref.dtype)


def _round_up(x, m):
    return ((x + m - 1) // m) * m


def _num_tensorcores():
    # Only used to decide whether splitting one large row block in two can
    # feed a second TensorCore (v7x). Conservative fallback: 1 core.
    try:
        dev = jax.devices()[0]
        return max(1, int(getattr(dev, "num_cores", 1) or 1))
    except Exception:
        return 1


_TM_CAP = 2048  # rows/block: ~1 MiB lane-padded LHS + <=1 MiB out per buffer.


def _choose_row_block(rows, num_cores):
    rows8 = _round_up(rows, 8)
    if rows8 > _TM_CAP:
        return _TM_CAP
    tm = rows8
    # Split a single block in two only when a 2nd TensorCore exists (v7x) and
    # each half still amortizes the ~0.35 us per-grid-step overhead.
    if num_cores >= 2 and rows8 >= 2048:
        tm = _round_up(pl.cdiv(rows8, 2), 8)
    return tm


def location_layer_forward(x_ncw, conv_weight, dense_weight, kernel_size):
    """x_ncw: [B, 2, T]; conv_weight: [F, 2, K] (torch OIW layout);
    dense_weight: [A, F] (torch layout). Returns [B, T, A] in x's dtype."""
    B, C_in, T = x_ncw.shape
    K = int(kernel_size)
    # "same" output length (T frames) only holds for odd K with pad=(K-1)//2.
    assert K % 2 == 1, "LocationLayer requires an odd attention_kernel_size"
    pad = (K - 1) // 2
    A = dense_weight.shape[0]
    out_dtype = x_ncw.dtype

    # Compute dtype: honor bf16 callers (halves input HBM reads); f32 otherwise.
    if x_ncw.dtype in (jnp.dtype(jnp.bfloat16), jnp.dtype(jnp.float32)):
        compute_dtype = x_ncw.dtype
    else:
        compute_dtype = jnp.dtype(jnp.float32)

    # ---- trace-time algebra / layout plumbing (XLA side) -------------------
    # Fuse conv + dense: W_fused[(k, c), a] = sum_f conv_w[f, c, k] * dense_w[a, f]
    w_fused = jnp.einsum("fck,af->kca",
                         conv_weight.astype(jnp.float32),
                         dense_weight.astype(jnp.float32))               # [K, C, A]
    w_fused = w_fused.reshape(K * C_in, A).astype(compute_dtype)         # [K*C, A]

    # Output-dim handling: no pad for A < 128 (full-extent last dim is legal;
    # padding would 4x writeback bytes) or when already a multiple of 128.
    if A >= 128 and A % 128 != 0:
        A_out = _round_up(A, 128)
        w_fused = jnp.pad(w_fused, ((0, 0), (0, A_out - A)))
    else:
        A_out = A

    # im2col with per-sequence zero padding (no cross-batch leakage):
    #   X[(b, t), (k, c)] = x_pad[b, t + k, c]
    x_tc = jnp.transpose(x_ncw, (0, 2, 1)).astype(compute_dtype)         # [B, T, C]
    x_padded = jnp.pad(x_tc, ((0, 0), (pad, pad), (0, 0)))               # [B, T+2p, C]
    cols = jnp.stack([x_padded[:, k:k + T, :] for k in range(K)], axis=2)  # [B,T,K,C]
    x_rows = cols.reshape(B * T, K * C_in)                               # [B*T, K*C]
    # TODO(synk): for the canonical Tacotron2 K=31, move im2col inside the
    # kernel (accumulate K shifted [tm, C] @ [C, A_out] dots over a
    # [tm + K - 1, C] window) to avoid the K-fold input-read expansion.

    rows = B * T
    tm = _choose_row_block(rows, _num_tensorcores())
    grid = (pl.cdiv(rows, tm),)  # last block masked by Pallas; no pad / trim

    itin = jnp.dtype(compute_dtype).itemsize
    itout = jnp.dtype(out_dtype).itemsize
    cost = pl.CostEstimate(
        flops=2 * rows * (K * C_in) * A_out,
        transcendentals=0,
        bytes_accessed=(rows * K * C_in * itin
                        + K * C_in * A_out * itin
                        + rows * A_out * itout))

    out = pl.pallas_call(
        _location_kernel,
        out_shape=jax.ShapeDtypeStruct((rows, A_out), out_dtype),
        grid=grid,
        in_specs=[
            # Row-blocked im2col input; last dim K*C equals the full array
            # extent, so the (8, 128) rule is satisfied.
            pl.BlockSpec((tm, K * C_in), lambda i: (i, 0)),
            # Fused weight: tiny, replicated to every grid step.
            pl.BlockSpec((K * C_in, A_out), lambda i: (0, 0)),
        ],
        out_specs=pl.BlockSpec((tm, A_out), lambda i: (i, 0)),
        compiler_params=pltpu.CompilerParams(
            dimension_semantics=("parallel",)),
        cost_estimate=cost,
    )(x_rows, w_fused)

    out = out.reshape(B, T, A_out)                                       # free reshape
    if A_out != A:
        out = out[..., :A]
    return out


def _xavier_uniform(key, shape, fan_in, fan_out, gain=1.0):
    bound = gain * (6.0 / (fan_in + fan_out)) ** 0.5
    return jax.random.uniform(key, shape, jnp.float32, -bound, bound)


def _reference(x_ncw, conv_weight, dense_weight, kernel_size):
    pad = (kernel_size - 1) // 2
    conv_out = lax.conv_general_dilated(
        x_ncw, conv_weight, window_strides=(1,), padding=[(pad, pad)],
        dimension_numbers=("NCH", "OIH", "NCH"))          # [B, F, T]
    h = jnp.transpose(conv_out, (0, 2, 1))                # [B, T, F]
    return jnp.einsum("btf,af->bta", h, dense_weight)     # [B, T, A]


if __name__ == "__main__":
    # Small, LocationLayer-consistent shapes.
    B, T = 2, 16
    attention_n_filters = 8
    attention_kernel_size = 5
    attention_dim = 32

    key = jax.random.PRNGKey(0)
    k_x, k_wc, k_wd = jax.random.split(key, 3)

    # Input: concatenation of current + cumulative attention weights -> 2 channels.
    x = jax.random.uniform(k_x, (B, 2, T), jnp.float32)

    # Deterministic xavier-uniform init (matching torch init scheme / shapes).
    K = attention_kernel_size
    conv_w = _xavier_uniform(
        k_wc, (attention_n_filters, 2, K),
        fan_in=2 * K, fan_out=attention_n_filters * K, gain=1.0)            # 'linear'
    dense_w = _xavier_uniform(
        k_wd, (attention_dim, attention_n_filters),
        fan_in=attention_n_filters, fan_out=attention_dim, gain=5.0 / 3.0)  # 'tanh'

    out = location_layer_forward(x, conv_w, dense_w, attention_kernel_size)
    out = jax.block_until_ready(out)

    ref = _reference(x, conv_w, dense_w, attention_kernel_size)
    assert out.shape == (B, T, attention_dim)
    assert out.dtype == x.dtype
    assert jnp.allclose(out, ref, atol=1e-4, rtol=1e-4), (
        float(jnp.max(jnp.abs(out - ref))))

    print("KERNEL_OK")
</pallas_src>

<mosaic_0001>
module attributes {stable_mosaic.version = 11 : i64} {
  func.func @_location_kernel(%arg0: i32, %arg1: memref<32x10xf32, #tpu.memory_space<vmem>>, %arg2: memref<10x32xf32, #tpu.memory_space<vmem>>, %arg3: memref<32x32xf32, #tpu.memory_space<vmem>>) attributes {dimension_semantics = [#tpu.dimension_semantics<parallel>], iteration_bounds = array<i64: 1>, scalar_prefetch = 0 : i64, scratch_operands = 0 : i64, tpu.core_type = #tpu.core_type<tc>, window_params = [{transform_indices = @transform_0, window_bounds = array<i64: 32, 10>}, {pipeline_mode = #tpu.pipeline_mode<synchronous>, transform_indices = @transform_1, window_bounds = array<i64: 10, 32>}, {transform_indices = @transform_2, window_bounds = array<i64: 32, 32>}]} {
    %c0 = arith.constant 0 : index
    %c0_0 = arith.constant 0 : index
    %0 = vector.load %arg1[%c0, %c0_0] : memref<32x10xf32, #tpu.memory_space<vmem>>, vector<32x10xf32>
    %c0_1 = arith.constant 0 : index
    %c0_2 = arith.constant 0 : index
    %1 = vector.load %arg2[%c0_1, %c0_2] : memref<10x32xf32, #tpu.memory_space<vmem>>, vector<10x32xf32>
    %cst = arith.constant dense<0.000000e+00> : vector<32x32xf32>
    %2 = tpu.matmul %0, %1, %cst {dimension_numbers = #tpu.dot_dimension_numbers<[1], [0], [0], [1], [0, 0, 1, 1], [], []>} : vector<32x10xf32>, vector<10x32xf32>, vector<32x32xf32> -> vector<32x32xf32>
    %c0_3 = arith.constant 0 : index
    %c0_4 = arith.constant 0 : index
    %3 = vector.load %arg3[%c0_3, %c0_4] : memref<32x32xf32, #tpu.memory_space<vmem>>, vector<32x32xf32>
    tpu.vector_store %arg3[%c0_3, %c0_4], %2 {strides = array<i32>} : memref<32x32xf32, #tpu.memory_space<vmem>>, vector<32x32xf32>,
    return
  }
  func.func @transform_0(%arg0: i32) -> (i32, i32) {
    %c0_i32 = arith.constant 0 : i32
    %c0_i32_0 = arith.constant 0 : i32
    return %arg0, %c0_i32 : i32, i32
  }
  func.func @transform_1(%arg0: i32) -> (i32, i32) {
    %c0_i32 = arith.constant 0 : i32
    %c0_i32_0 = arith.constant 0 : i32
    %c0_i32_1 = arith.constant 0 : i32
    return %c0_i32, %c0_i32_0 : i32, i32
  }
  func.func @transform_2(%arg0: i32) -> (i32, i32) {
    %c0_i32 = arith.constant 0 : i32
    %c0_i32_0 = arith.constant 0 : i32
    return %arg0, %c0_i32 : i32, i32
  }
}

</mosaic_0001>

<bundles_post_ra>
// kernel: tpu_custom_call.1
= control target key start
LH: loop header
LB: loop body
LE: loop exit
PB: predicated region body
PF: predicated region fallthrough
CT: control target
= control target key end

     0   :  { %vm31_vm0 = vcmask 1041408   ;;  %vm198_vm1 = vmmov 1   ;;  %vm18_vm3 = vcmask 80896   ;;  %s247_s0 = inlined_call_operand.vmem [shape: f32[32,10], index: 0, kind: input, shape index: {}]   ;;  %s248_s1 = inlined_call_operand.vmem [shape: f32[10,32], index: 1, kind: input, shape index: {}]   ;;  %s249_s2 = inlined_call_operand.hbm [shape: f32[32,32], index: 2, kind: output, shape index: {}]  }
   0x1   :  { %v16_v0 = vld [vmem:[%s248_s1] sm:$0xff]  ;;  %v17_v1 = vld [vmem:[%s248_s1 + $0x8] sm:$0x3]  ;;  %vm163_vm2 = vmpackc.low %vm31_vm0, %vm198_vm1 }
   0x2   :  { %v12_v2 = vld [vmem:[%s247_s0] sm:$0xff]  ;;  %v162_v3 = vpack.c.bf16 %v17_v1, %v16_v0  ;;  %v14_v4 = vld [vmem:[%s247_s0 + $0x10] sm:$0xff] }
   0x3   :  { %156 = vmatprep.mubr.msk.f32.mxu0 %vm18_vm3, %v12_v2  ;;  %159 = vmatprep.mubr.msk.f32.mxu1 %vm18_vm3, %v14_v4 }
   0x4   :  { %7 = vsyncpa [#allocation3], 0  ;;  %164 = vmatprep.subr.msk.bf16.mxu0 %vm163_vm2, %v162_v3  ;;  %168 = vmatprep.subr.msk.bf16.mxu1 %vm163_vm2, %v162_v3  ;;  %v13_v5 = vld [vmem:[%s247_s0 + $0x8] sm:$0xff]  ;;  %v15_v6 = vld [vmem:[%s247_s0 + $0x18] sm:$0xff]  ;;  %s199_s20 = smov [#allocation2]   ;;  %vm120_vm4 = vcmask 261120  }
   0x5   :  { %167 = vmatpush3.bf16.msk.msra.mxu0 %vm163_vm2, %v162_v3  ;;  %169 = vmatpush3.bf16.msk.msra.mxu1 %vm163_vm2, %v162_v3  ;;  %s130_s21 = sshll.u32 %s199_s20, 4  ;;  %s131_s21 = int_to_ptr.vmem [resolvable:$true] %s130_s21 }
   0x6   :  { %s174_s22 = scalar_lea.vmem %s131_s21, 512  ;;  %p179_p1 = scmp.lt.s32.totalorder %s131_s21, %s131_s21 }
   0x7   :  { %p175_p0 = scmp.ne.s32.totalorder %s131_s21, %s174_s22  ;;  %p180_p2 = scmp.lt.s32.totalorder %s174_s22, %s174_s22 }
   0x8   :  { %157 = vmatmul.mubr.msk.f32.vlgmr.msra.gmra.mrb[0].mxu0 %vm18_vm3, %v13_v5  ;;  %160 = vmatmul.mubr.msk.f32.vlgmr.msra.gmra.mrb[0].mxu1 %vm18_vm3, %v15_v6 }
   0x9   :  { %p181_p3 = por %p180_p2, %p179_p1 }
   0xb   :  { %p182_p4 = pnand %p181_p3, %p175_p0 }
  0xdb   :  { %v158_v7 = vpop.f32.mrb[0].mxu0  ;;  %v161_v8 = vpop.f32.mrb[0].mxu1 }
  0xdc   :  { %122 = vst.msk [vmem:[#allocation2 + $0x8] sm:$0xff] %vm120_vm4, %v158_v7  ;;  %124 = vst.msk [vmem:[#allocation2 + $0x18] sm:$0xff] %vm120_vm4, %v161_v8  ;;  %v101_v9 = vpop.f32.mrb[1].mxu0  ;;  %v111_v10 = vpop.f32.mrb[1].mxu1 }
  0xdd   :  { %121 = vst.msk [vmem:[#allocation2] sm:$0xff] %vm120_vm4, %v101_v9  ;;  %123 = vst.msk [vmem:[#allocation2 + $0x10] sm:$0xff] %vm120_vm4, %v111_v10 }
  0xde   :  { %185 = shalt.err (!%p182_p4)
}
  0xdf   :  { %s186_s24 = scalar_lea.hbm %s249_s2, 512 }
  0xe0   :  { %p187_p5 = scmp.ne.s32.totalorder %s249_s2, %s186_s24  ;;  %p190_p6 = scmp.lt.u32.totalorder %s186_s24, %s249_s2 }
  0xe2   :  { %p192_p7 = pnand %p190_p6, %p187_p5 }
  0xe4   :  { %195 = shalt.err (!%p192_p7)
}
  0xe5   :  { %s200_s29 = smov 128   ;;  %s201_s30 = smov 8  }
  0xe6   :  { %136 = dma.vmem_to_hbm [thread:$0]  %s131_s21, 512, %s249_s2, [#allocation3], %s200_s29, %s200_s29, %s201_s30  }
  0xe7   :  { %196 = dma.done.wait [#allocation3], 512  }
  0xe8   :  { %197 = vsyncadd [#allocation3], 4294966784 }
  0xe9   :  { %140 = vsyncpa [#allocation3], 1 }

</bundles_post_ra>
